<compile_context>
chip_gen: v7x
topology: tpu7x:2x2x1
jax: 0.10.0
libtpu: 0.0.40
codegen_flags: <defaults>
</compile_context>

<pallas_src>
import functools

import numpy as np
import jax
import jax.numpy as jnp
from jax.experimental import pallas as pl
from jax.experimental.pallas import tpu as pltpu

_LANE = 128                    # vreg lane width (last dim multiple of 128)
_PALLAS_MIN_ELEMS = 1 << 20    # below this, plain XLA add wins (dispatch-bound)
_MIN_SPLIT_ROWS = 2048         # only force a >=2-step grid if blocks stay >= this many rows
_MAX_TILE_ROWS_CAP = 32768     # hard cap to keep per-step DMA latency bounded


def _sublane(dtype) -> int:
    # Sub-32-bit dtypes pack along sublanes: native tile is (32/bits * 8, 128).
    itemsize = np.dtype(dtype).itemsize
    if itemsize >= 4:
        return 8
    return (4 // itemsize) * 8   # bf16/f16 -> 16, int8/fp8 -> 32


@functools.lru_cache(maxsize=None)
def _vmem_capacity_bytes() -> int:
    try:
        return int(pltpu.get_tpu_info().vmem_capacity_bytes)
    except Exception:
        return 64 * 1024 * 1024  # v7x-safe fallback (smallest per-TC VMEM)


def _tiling(dtype):
    """Largest lane-dense block whose double-buffered working set
    (3 arrays x 2 buffers) stays well under this chip's physical VMEM."""
    itemsize = np.dtype(dtype).itemsize
    sub = _sublane(dtype)
    budget = (_vmem_capacity_bytes() * 3) // 8          # ~24 MiB v7x, ~48 MiB v5e/v6e
    max_rows = budget // (6 * _LANE * itemsize)         # 3 arrays x 2 buffers
    max_rows = max(sub, (max_rows // sub) * sub)
    return sub, min(max_rows, _MAX_TILE_ROWS_CAP)


def _add_kernel(s_ref, a_ref, o_ref):
    # Pure VPU elementwise add on one lane-dense (tile_rows, 128) block.
    o_ref[...] = s_ref[...] + a_ref[...]


def grounded_dynamics_forward(s: jax.Array, a: jax.Array, *,
                              force_pallas: bool = False) -> jax.Array:
    """Pallas equivalent of grounded_dynamics.forward: returns s + a."""
    assert s.shape == a.shape, "state/action shapes must match (nx == nu == 2)"
    assert s.dtype == a.dtype

    orig_shape = s.shape
    n = s.size

    # --- fast path: tiny problems are dispatch-bound; let XLA fuse the add ---
    if not force_pallas and n < _PALLAS_MIN_ELEMS:
        return s + a

    sub, max_tile_rows = _tiling(s.dtype)
    granule = sub * _LANE                    # one native (sub, 128) tile

    s_flat = s.reshape(-1)
    a_flat = a.reshape(-1)

    # Kernel covers the granule-aligned prefix (bitcast reshape, no jnp.pad).
    n_main = (n // granule) * granule
    padded = 0
    if n_main == 0:
        # Only reachable with force_pallas on tiny inputs: pad to one granule.
        padded = granule - n
        s_flat = jnp.pad(s_flat, (0, padded))
        a_flat = jnp.pad(a_flat, (0, padded))
        n_main = granule

    rows = n_main // _LANE                   # multiple of `sub`
    tile_rows = min(max_tile_rows, rows)
    if tile_rows == rows and rows >= 2 * _MIN_SPLIT_ROWS:
        # Keep >=2 grid steps so DMA stays pipelined and v7x can shard the
        # row axis across its 2 TensorCores.
        tile_rows = ((-(-rows // 2)) + sub - 1) // sub * sub
    grid = (-(-rows // tile_rows),)          # last block may be partial (stores masked)

    itemsize = np.dtype(s.dtype).itemsize
    block_bytes = tile_rows * _LANE * itemsize
    vmem_limit = int(min(_vmem_capacity_bytes() * 7 // 8,
                         max(32 * 1024 * 1024, 8 * block_bytes)))

    block = pl.BlockSpec((tile_rows, _LANE), lambda i: (i, 0))
    main_out = pl.pallas_call(
        _add_kernel,
        out_shape=jax.ShapeDtypeStruct((rows, _LANE), s.dtype),
        grid=grid,
        in_specs=[block, block],
        out_specs=block,
        compiler_params=pltpu.CompilerParams(
            dimension_semantics=("parallel",),   # 2-TC sharding on v7x
            vmem_limit_bytes=vmem_limit,
        ),
    )(s_flat[:n_main].reshape(rows, _LANE),
      a_flat[:n_main].reshape(rows, _LANE))

    out_flat = main_out.reshape(-1)
    if padded:
        out_flat = out_flat[:n]
    else:
        tail = n - n_main
        if tail:
            # Unaligned tail: plain XLA add instead of padding both inputs.
            out_flat = jnp.concatenate(
                [out_flat, s_flat[n_main:] + a_flat[n_main:]])
    return out_flat.reshape(orig_shape)


if __name__ == "__main__":
    key = jax.random.PRNGKey(0)
    k_s, k_a = jax.random.split(key)

    # Module nominal shapes: nx == nu == 2 (a_lb/a_ub unused in forward).
    batch, nx = 8, 2
    s = jax.random.normal(k_s, (batch, nx), dtype=jnp.float32)
    a = jax.random.uniform(k_a, (batch, nx), dtype=jnp.float32,
                           minval=-0.2, maxval=0.2)
    ref = s + a

    # 1) default path at the nominal tiny shape -> fast path (plain XLA add).
    out_fast = grounded_dynamics_forward(s, a)
    jax.block_until_ready(out_fast)
    assert out_fast.shape == (batch, nx) and out_fast.dtype == jnp.float32
    assert jnp.allclose(out_fast, ref, atol=1e-6, rtol=1e-6)

    # 2) force the Pallas kernel at the same small shape.
    out_kernel = grounded_dynamics_forward(s, a, force_pallas=True)
    jax.block_until_ready(out_kernel)
    assert out_kernel.shape == (batch, nx)
    assert jnp.allclose(out_kernel, ref, atol=1e-6, rtol=1e-6)

    # 3) larger input: natural kernel path with a multi-step grid and an
    #    unaligned tail handled by XLA outside the kernel.
    big_b = (1 << 20) + 5     # n = 2*big_b > _PALLAS_MIN_ELEMS, not granule-aligned
    sb = jax.random.normal(k_s, (big_b, nx), dtype=jnp.float32)
    ab = jax.random.uniform(k_a, (big_b, nx), dtype=jnp.float32,
                            minval=-0.2, maxval=0.2)
    ob = grounded_dynamics_forward(sb, ab)
    jax.block_until_ready(ob)
    assert jnp.allclose(ob, sb + ab, atol=1e-6, rtol=1e-6)

    print("KERNEL_OK")
</pallas_src>

<mosaic_0001>
module attributes {stable_mosaic.version = 11 : i64} {
  func.func @_add_kernel(%arg0: i32, %arg1: memref<8x128xf32, #tpu.memory_space<vmem>>, %arg2: memref<8x128xf32, #tpu.memory_space<vmem>>, %arg3: memref<8x128xf32, #tpu.memory_space<vmem>>) attributes {dimension_semantics = [#tpu.dimension_semantics<parallel>], iteration_bounds = array<i64: 1>, scalar_prefetch = 0 : i64, scratch_operands = 0 : i64, tpu.core_type = #tpu.core_type<tc>, window_params = [{transform_indices = @transform_0, window_bounds = array<i64: 8, 128>}, {transform_indices = @transform_1, window_bounds = array<i64: 8, 128>}, {transform_indices = @transform_2, window_bounds = array<i64: 8, 128>}]} {
    %c0 = arith.constant 0 : index
    %c0_0 = arith.constant 0 : index
    %0 = vector.load %arg1[%c0, %c0_0] : memref<8x128xf32, #tpu.memory_space<vmem>>, vector<8x128xf32>
    %c0_1 = arith.constant 0 : index
    %c0_2 = arith.constant 0 : index
    %1 = vector.load %arg2[%c0_1, %c0_2] : memref<8x128xf32, #tpu.memory_space<vmem>>, vector<8x128xf32>
    %2 = arith.addf %0, %1 : vector<8x128xf32>
    %c0_3 = arith.constant 0 : index
    %c0_4 = arith.constant 0 : index
    %3 = vector.load %arg3[%c0_3, %c0_4] : memref<8x128xf32, #tpu.memory_space<vmem>>, vector<8x128xf32>
    tpu.vector_store %arg3[%c0_3, %c0_4], %2 {strides = array<i32>} : memref<8x128xf32, #tpu.memory_space<vmem>>, vector<8x128xf32>,
    return
  }
  func.func @transform_0(%arg0: i32) -> (i32, i32) {
    %c0_i32 = arith.constant 0 : i32
    %c0_i32_0 = arith.constant 0 : i32
    return %arg0, %c0_i32 : i32, i32
  }
  func.func @transform_1(%arg0: i32) -> (i32, i32) {
    %c0_i32 = arith.constant 0 : i32
    %c0_i32_0 = arith.constant 0 : i32
    return %arg0, %c0_i32 : i32, i32
  }
  func.func @transform_2(%arg0: i32) -> (i32, i32) {
    %c0_i32 = arith.constant 0 : i32
    %c0_i32_0 = arith.constant 0 : i32
    return %arg0, %c0_i32 : i32, i32
  }
}

</mosaic_0001>

<bundles_post_ra>
// kernel: tpu_custom_call.1
= control target key start
LH: loop header
LB: loop body
LE: loop exit
PB: predicated region body
PF: predicated region fallthrough
CT: control target
= control target key end

     0   :  { %7 = vsyncpa [#allocation3], 0  ;;  %s185_s0 = inlined_call_operand.hbm [shape: f32[8,128], index: 0, kind: input, shape index: {}]   ;;  %s186_s1 = inlined_call_operand.hbm [shape: f32[8,128], index: 1, kind: input, shape index: {}]   ;;  %s187_s2 = inlined_call_operand.hbm [shape: f32[8,128], index: 2, kind: output, shape index: {}]  }
   0x1   :  { %8 = vsyncpa [#allocation6], 0 }
   0x2   :  { %9 = vsyncpa [#allocation4], 0  ;;  %s131_s9 = smov [#allocation2]   ;;  %s132_s11 = smov [#allocation5]  }
   0x3   :  { %s16_s10 = sshll.u32 %s131_s9, 4  ;;  %s26_s12 = sshll.u32 %s132_s11, 4  ;;  %s17_s10 = int_to_ptr.vmem [resolvable:$true] %s16_s10  ;;  %s27_s12 = int_to_ptr.vmem [resolvable:$true] %s26_s12 }
   0x4   :  { %s59_s15 = scalar_lea.hbm %s185_s0, 128 }
   0x5   :  { %p60_p0 = scmp.ne.s32.totalorder %s185_s0, %s59_s15  ;;  %p63_p1 = scmp.lt.u32.totalorder %s59_s15, %s185_s0 }
   0x7   :  { %p65_p2 = pnand %p63_p1, %p60_p0 }
   0x9   :  { %68 = shalt.err (!%p65_p2)
}
   0xa   :  { %s69_s20 = scalar_lea.vmem %s17_s10, 128  ;;  %p74_p4 = scmp.lt.s32.totalorder %s17_s10, %s17_s10 }
   0xb   :  { %p70_p3 = scmp.ne.s32.totalorder %s17_s10, %s69_s20  ;;  %p75_p5 = scmp.lt.s32.totalorder %s69_s20, %s69_s20 }
   0xd   :  { %p76_p6 = por %p75_p5, %p74_p4 }
   0xf   :  { %p77_p7 = pnand %p76_p6, %p70_p3 }
  0x11   :  { %80 = shalt.err (!%p77_p7)
}
  0x12   :  { %19 = dma.hbm_to_vmem [thread:$0]  %s185_s0, 128, %s17_s10, [#allocation3]  }
  0x13   :  { %s81_s25 = scalar_lea.hbm %s186_s1, 128 }
  0x14   :  { %p82_p8 = scmp.ne.s32.totalorder %s186_s1, %s81_s25  ;;  %p85_p9 = scmp.lt.u32.totalorder %s81_s25, %s186_s1 }
  0x16   :  { %p87_p10 = pnand %p85_p9, %p82_p8 }
  0x18   :  { %90 = shalt.err (!%p87_p10)
}
  0x19   :  { %s91_s30 = scalar_lea.vmem %s27_s12, 128  ;;  %p96_p12 = scmp.lt.s32.totalorder %s27_s12, %s27_s12 }
  0x1a   :  { %p92_p11 = scmp.ne.s32.totalorder %s27_s12, %s91_s30  ;;  %p97_p13 = scmp.lt.s32.totalorder %s91_s30, %s91_s30 }
  0x1c   :  { %p98_p0 = por %p97_p13, %p96_p12 }
  0x1e   :  { %p99_p1 = pnand %p98_p0, %p92_p11 }
  0x20   :  { %102 = shalt.err (!%p99_p1)
}
  0x21   :  { %29 = dma.hbm_to_vmem [thread:$0]  %s186_s1, 128, %s27_s12, [#allocation6]  }
  0x22   :  { %125 = dma.done.wait [#allocation3], 128  }
  0x23   :  { %126 = vsyncadd [#allocation3], 4294967168 }
  0x24   :  { %127 = dma.done.wait [#allocation6], 128  }
  0x25   :  { %128 = vsyncadd [#allocation6], 4294967168  ;;  %s133_s4 = smov [#allocation7]   ;;  %v36_v0 = vld [vmem:[#allocation2] sm:$0xff]  ;;  %v37_v1 = vld [vmem:[#allocation5] sm:$0xff] }
  0x26   :  { %s46_s5 = sshll.u32 %s133_s4, 4  ;;  %v38_v2 = vadd.f32 %v37_v1, %v36_v0  ;;  %s47_s5 = int_to_ptr.vmem [resolvable:$true] %s46_s5 }
  0x27   :  { %s103_s6 = scalar_lea.vmem %s47_s5, 128  ;;  %p108_p3 = scmp.lt.s32.totalorder %s47_s5, %s47_s5 }
  0x28   :  { %39 = vst [vmem:[#allocation7] sm:$0xff] %v38_v2  ;;  %p104_p2 = scmp.ne.s32.totalorder %s47_s5, %s103_s6  ;;  %p109_p4 = scmp.lt.s32.totalorder %s103_s6, %s103_s6 }
  0x2a   :  { %p110_p5 = por %p109_p4, %p108_p3 }
  0x2c   :  { %p111_p6 = pnand %p110_p5, %p104_p2 }
  0x2e   :  { %114 = shalt.err (!%p111_p6)
}
  0x2f   :  { %s115_s8 = scalar_lea.hbm %s187_s2, 128 }
  0x30   :  { %p116_p7 = scmp.ne.s32.totalorder %s187_s2, %s115_s8  ;;  %p119_p8 = scmp.lt.u32.totalorder %s115_s8, %s187_s2 }
  0x32   :  { %p121_p9 = pnand %p119_p8, %p116_p7 }
  0x34   :  { %124 = shalt.err (!%p121_p9)
}
  0x35   :  { %49 = dma.vmem_to_hbm [thread:$0]  %s47_s5, 128, %s187_s2, [#allocation4]  }
  0x36   :  { %129 = dma.done.wait [#allocation4], 128  }
  0x37   :  { %130 = vsyncadd [#allocation4], 4294967168 }
  0x38   :  { %53 = vsyncpa [#allocation3], 1 }
  0x39   :  { %54 = vsyncpa [#allocation6], 1 }
  0x3a   :  { %55 = vsyncpa [#allocation4], 1 }

</bundles_post_ra>
